<compile_context>
chip_gen: v5e
topology: v5e:2x2
jax: 0.10.0
libtpu: 0.0.40
codegen_flags: <defaults>
</compile_context>

<pallas_src>
import functools

import jax
import jax.numpy as jnp
from jax import lax
from jax.experimental import pallas as pl
from jax.experimental.pallas import tpu as pltpu


def _round_up(x, m):
    return ((x + m - 1) // m) * m


def _make_gather_kernel(n_q):
    """Build the single-step gather kernel for a static query count n_q.

    Kernel refs:
      ts_ref   : SMEM (n_q,) int32      -- scalar-prefetched time indices
      traj_ref : VMEM (Tp, Dp) float    -- fused, lane-padded trajectory buffer
      out_ref  : VMEM (n_q, Dp) float   -- one gathered row per query
    """

    def kernel(ts_ref, traj_ref, out_ref):
        def body(i, carry):
            t = ts_ref[i]
            # Element-index row gather: block_shape equals the full array, so
            # pl.ds(t, 1) addresses element rows directly (no block/element
            # ambiguity as in the old per-query index_map design).
            out_ref[pl.ds(i, 1), :] = traj_ref[pl.ds(t, 1), :]
            return carry

        lax.fori_loop(0, n_q, body, 0, unroll=True)

    return kernel


@functools.partial(jax.jit, static_argnames=("dim_x", "dim_u"))
def _bvp_gather(ts, traj_full, *, dim_x, dim_u):
    """Batched gather of (x, u) rows for time indices `ts`.

    ts        : (n,) int32                — time indices in [0, T]
    traj_full : (Tp, Dp) float            — fused lane-padded trajectory,
                                            row t = [x_full[t], u_row[t], 0-pad]
    returns   : x (n, dim_x), u (n, dim_u) — u rows for t == T are zeros.
    """
    n = ts.shape[0]
    Tp, Dp = traj_full.shape

    out = pl.pallas_call(
        _make_gather_kernel(n),
        out_shape=jax.ShapeDtypeStruct((n, Dp), traj_full.dtype),
        grid_spec=pltpu.PrefetchScalarGridSpec(
            num_scalar_prefetch=1,
            grid=(1,),
            in_specs=[
                # Whole fused trajectory as one VMEM block (constant index_map).
                pl.BlockSpec((Tp, Dp), lambda i, ts_ref: (0, 0)),
            ],
            out_specs=pl.BlockSpec((n, Dp), lambda i, ts_ref: (0, 0)),
        ),
        compiler_params=pltpu.CompilerParams(
            dimension_semantics=("arbitrary",)),
    )(ts, traj_full)

    x = out[:, :dim_x]
    u = out[:, dim_x:dim_x + dim_u]
    return x, u


class BVPTrajectory:
    """JAX/Pallas mirror of score_po.trajectory.BVPTrajectory."""

    def __init__(self, dim_x, dim_u, T, x0, xT):
        self.dim_x = dim_x
        self.dim_u = dim_u
        self.T = T
        self.x0 = x0
        self.xT = xT
        # nn.Parameter-equivalents (zeros in the PyTorch module).
        self.set_parameters(
            xnext_trj=jnp.zeros((T - 1, dim_x), dtype=x0.dtype),
            u_trj=jnp.zeros((T, dim_u), dtype=x0.dtype),
        )

    def set_parameters(self, xnext_trj, u_trj):
        """Update decision variables and rebuild the fused gather buffer once.

        Buffer layout (built once per parameter update, not per query):
          row t (t in [0, T]) = [ x_full[t] , u_row[t] , zero lane padding ]
          with u_row[T] = 0 (PyTorch returns None for u at t == T).
        Time axis padded to a multiple of 8, feature axis to a multiple of 128
        so all kernel loads/stores are lane-dense and tile-aligned.
        """
        self.xnext_trj = xnext_trj
        self.u_trj = u_trj

        T, dim_x, dim_u = self.T, self.dim_x, self.dim_u
        dtype = self.x0.dtype

        x_full = jnp.concatenate(
            (self.x0[None, :], xnext_trj, self.xT[None, :]), axis=0)       # (T+1, dim_x)
        u_full = jnp.concatenate(
            (u_trj, jnp.zeros((1, dim_u), dtype=dtype)), axis=0)            # (T+1, dim_u)
        fused = jnp.concatenate((x_full, u_full), axis=1)                   # (T+1, D)

        D = dim_x + dim_u
        Dp = _round_up(max(D, 1), 128)
        Tp = _round_up(T + 1, 8)
        padded = jnp.zeros((Tp, Dp), dtype=dtype)
        padded = padded.at[:T + 1, :D].set(fused)
        self._traj_full = padded

    def get_full_trajectory(self):
        x_trj = jnp.concatenate(
            (self.x0[None, :], self.xnext_trj, self.xT[None, :]), axis=0)
        return x_trj, self.u_trj

    def forward_batch(self, ts):
        """Batched queries through the Pallas kernel.

        Returns (x: (n, dim_x), u: (n, dim_u)). u rows whose t == T are zeros
        (never stale data); forward() maps them to None.
        """
        ts = jnp.asarray(ts, dtype=jnp.int32)
        return _bvp_gather(ts, self._traj_full,
                           dim_x=self.dim_x, dim_u=self.dim_u)

    def forward(self, t):
        """Single query with a Python int t — plain indexing (a Pallas launch
        for one ~28-byte lookup is pure overhead; see perf review), exactly
        mirroring the PyTorch module's Python-level branching."""
        if t == 0:
            return self.x0, self.u_trj[0]
        elif t == self.T:
            return self.xT, None
        else:
            return self.xnext_trj[t - 1], self.u_trj[t]


if __name__ == "__main__":
    # Small problem sizes consistent with the module's __init__.
    dim_x, dim_u, T = 4, 3, 8

    key = jax.random.PRNGKey(0)
    k0, k1, k2, k3 = jax.random.split(key, 4)

    x0 = jax.random.normal(k0, (dim_x,), dtype=jnp.float32)
    xT = jax.random.normal(k1, (dim_x,), dtype=jnp.float32)
    # Parameters are zeros in the module; use random values so selection is
    # observable (shapes match declare_parameters()).
    xnext_trj = jax.random.normal(k2, (T - 1, dim_x), dtype=jnp.float32)
    u_trj = jax.random.normal(k3, (T, dim_u), dtype=jnp.float32)

    traj = BVPTrajectory(dim_x, dim_u, T, x0, xT)
    traj.set_parameters(xnext_trj, u_trj)

    ok = True

    # --- batched path: all time indices in a single pallas_call ---
    ts = jnp.arange(T + 1, dtype=jnp.int32)
    x_batch, u_batch = traj.forward_batch(ts)
    x_batch = jax.block_until_ready(x_batch)
    u_batch = jax.block_until_ready(u_batch)

    for t in range(T + 1):
        if t == 0:
            x_ref, u_ref = x0, u_trj[0]
        elif t == T:
            x_ref, u_ref = xT, jnp.zeros((dim_u,), jnp.float32)  # zeroed slot
        else:
            x_ref, u_ref = xnext_trj[t - 1], u_trj[t]

        ok &= bool(jnp.allclose(x_batch[t], x_ref))
        ok &= bool(jnp.allclose(u_batch[t], u_ref))

    # --- out-of-order / repeated queries through the kernel ---
    ts2 = jnp.array([T, 0, 3, 3, 1], dtype=jnp.int32)
    x2, u2 = traj.forward_batch(ts2)
    x2 = jax.block_until_ready(x2)
    u2 = jax.block_until_ready(u2)
    ok &= bool(jnp.allclose(x2[0], xT))
    ok &= bool(jnp.allclose(x2[1], x0)) and bool(jnp.allclose(u2[1], u_trj[0]))
    ok &= bool(jnp.allclose(x2[2], xnext_trj[2])) and bool(jnp.allclose(u2[2], u_trj[3]))
    ok &= bool(jnp.allclose(x2[3], x2[2])) and bool(jnp.allclose(u2[3], u2[2]))
    ok &= bool(jnp.allclose(x2[4], xnext_trj[0])) and bool(jnp.allclose(u2[4], u_trj[1]))

    # --- single-query path (PyTorch forward semantics, incl. None at t == T) ---
    for t in (0, T // 2, T):
        x, u = traj.forward(t)
        x = jax.block_until_ready(x)
        if t == 0:
            ok &= bool(jnp.allclose(x, x0)) and u is not None \
                and bool(jnp.allclose(u, u_trj[0]))
        elif t == T:
            ok &= bool(jnp.allclose(x, xT)) and (u is None)
        else:
            ok &= bool(jnp.allclose(x, xnext_trj[t - 1])) and u is not None \
                and bool(jnp.allclose(u, u_trj[t]))

    # --- full trajectory glue ---
    x_full, u_full = traj.get_full_trajectory()
    ok &= bool(jnp.allclose(x_full[0], x0)) and bool(jnp.allclose(x_full[-1], xT))
    ok &= bool(jnp.allclose(x_full[1:-1], xnext_trj))
    ok &= bool(jnp.allclose(u_full, u_trj))

    if ok:
        print("KERNEL_OK")
    else:
        print("KERNEL_MISMATCH")
</pallas_src>

<mosaic_0001>
module attributes {stable_mosaic.version = 11 : i64} {
  func.func @kernel(%arg0: i32, %arg1: memref<9xi32, #tpu.memory_space<smem>>, %arg2: memref<16x128xf32, #tpu.memory_space<vmem>>, %arg3: memref<9x128xf32, #tpu.memory_space<vmem>>) attributes {dimension_semantics = [#tpu.dimension_semantics<arbitrary>], iteration_bounds = array<i64: 1>, scalar_prefetch = 1 : i64, scratch_operands = 0 : i64, tpu.core_type = #tpu.core_type<tc>, window_params = [{pipeline_mode = #tpu.pipeline_mode<synchronous>, transform_indices = @transform_0, window_bounds = array<i64: 16, 128>}, {pipeline_mode = #tpu.pipeline_mode<synchronous>, transform_indices = @transform_1, window_bounds = array<i64: 9, 128>}]} {
    %c0_i32 = arith.constant 0 : i32
    %0 = arith.index_cast %c0_i32 : i32 to index
    %1 = memref.load %arg1[%0] : memref<9xi32, #tpu.memory_space<smem>>
    %2 = arith.index_cast %1 : i32 to index
    %c0 = arith.constant 0 : index
    %3 = vector.load %arg2[%2, %c0] : memref<16x128xf32, #tpu.memory_space<vmem>>, vector<1x128xf32>
    %4 = arith.index_cast %c0_i32 : i32 to index
    %c0_0 = arith.constant 0 : index
    %5 = vector.load %arg3[%4, %c0_0] : memref<9x128xf32, #tpu.memory_space<vmem>>, vector<1x128xf32>
    tpu.vector_store %arg3[%4, %c0_0], %3 {strides = array<i32>} : memref<9x128xf32, #tpu.memory_space<vmem>>, vector<1x128xf32>,
    %c1_i32 = arith.constant 1 : i32
    %6 = arith.index_cast %c1_i32 : i32 to index
    %7 = memref.load %arg1[%6] : memref<9xi32, #tpu.memory_space<smem>>
    %8 = arith.index_cast %7 : i32 to index
    %c0_1 = arith.constant 0 : index
    %9 = vector.load %arg2[%8, %c0_1] : memref<16x128xf32, #tpu.memory_space<vmem>>, vector<1x128xf32>
    %10 = arith.index_cast %c1_i32 : i32 to index
    %c0_2 = arith.constant 0 : index
    %11 = vector.load %arg3[%10, %c0_2] : memref<9x128xf32, #tpu.memory_space<vmem>>, vector<1x128xf32>
    tpu.vector_store %arg3[%10, %c0_2], %9 {strides = array<i32>} : memref<9x128xf32, #tpu.memory_space<vmem>>, vector<1x128xf32>,
    %c2_i32 = arith.constant 2 : i32
    %12 = arith.index_cast %c2_i32 : i32 to index
    %13 = memref.load %arg1[%12] : memref<9xi32, #tpu.memory_space<smem>>
    %14 = arith.index_cast %13 : i32 to index
    %c0_3 = arith.constant 0 : index
    %15 = vector.load %arg2[%14, %c0_3] : memref<16x128xf32, #tpu.memory_space<vmem>>, vector<1x128xf32>
    %16 = arith.index_cast %c2_i32 : i32 to index
    %c0_4 = arith.constant 0 : index
    %17 = vector.load %arg3[%16, %c0_4] : memref<9x128xf32, #tpu.memory_space<vmem>>, vector<1x128xf32>
    tpu.vector_store %arg3[%16, %c0_4], %15 {strides = array<i32>} : memref<9x128xf32, #tpu.memory_space<vmem>>, vector<1x128xf32>,
    %c3_i32 = arith.constant 3 : i32
    %18 = arith.index_cast %c3_i32 : i32 to index
    %19 = memref.load %arg1[%18] : memref<9xi32, #tpu.memory_space<smem>>
    %20 = arith.index_cast %19 : i32 to index
    %c0_5 = arith.constant 0 : index
    %21 = vector.load %arg2[%20, %c0_5] : memref<16x128xf32, #tpu.memory_space<vmem>>, vector<1x128xf32>
    %22 = arith.index_cast %c3_i32 : i32 to index
    %c0_6 = arith.constant 0 : index
    %23 = vector.load %arg3[%22, %c0_6] : memref<9x128xf32, #tpu.memory_space<vmem>>, vector<1x128xf32>
    tpu.vector_store %arg3[%22, %c0_6], %21 {strides = array<i32>} : memref<9x128xf32, #tpu.memory_space<vmem>>, vector<1x128xf32>,
    %c4_i32 = arith.constant 4 : i32
    %24 = arith.index_cast %c4_i32 : i32 to index
    %25 = memref.load %arg1[%24] : memref<9xi32, #tpu.memory_space<smem>>
    %26 = arith.index_cast %25 : i32 to index
    %c0_7 = arith.constant 0 : index
    %27 = vector.load %arg2[%26, %c0_7] : memref<16x128xf32, #tpu.memory_space<vmem>>, vector<1x128xf32>
    %28 = arith.index_cast %c4_i32 : i32 to index
    %c0_8 = arith.constant 0 : index
    %29 = vector.load %arg3[%28, %c0_8] : memref<9x128xf32, #tpu.memory_space<vmem>>, vector<1x128xf32>
    tpu.vector_store %arg3[%28, %c0_8], %27 {strides = array<i32>} : memref<9x128xf32, #tpu.memory_space<vmem>>, vector<1x128xf32>,
    %c5_i32 = arith.constant 5 : i32
    %30 = arith.index_cast %c5_i32 : i32 to index
    %31 = memref.load %arg1[%30] : memref<9xi32, #tpu.memory_space<smem>>
    %32 = arith.index_cast %31 : i32 to index
    %c0_9 = arith.constant 0 : index
    %33 = vector.load %arg2[%32, %c0_9] : memref<16x128xf32, #tpu.memory_space<vmem>>, vector<1x128xf32>
    %34 = arith.index_cast %c5_i32 : i32 to index
    %c0_10 = arith.constant 0 : index
    %35 = vector.load %arg3[%34, %c0_10] : memref<9x128xf32, #tpu.memory_space<vmem>>, vector<1x128xf32>
    tpu.vector_store %arg3[%34, %c0_10], %33 {strides = array<i32>} : memref<9x128xf32, #tpu.memory_space<vmem>>, vector<1x128xf32>,
    %c6_i32 = arith.constant 6 : i32
    %36 = arith.index_cast %c6_i32 : i32 to index
    %37 = memref.load %arg1[%36] : memref<9xi32, #tpu.memory_space<smem>>
    %38 = arith.index_cast %37 : i32 to index
    %c0_11 = arith.constant 0 : index
    %39 = vector.load %arg2[%38, %c0_11] : memref<16x128xf32, #tpu.memory_space<vmem>>, vector<1x128xf32>
    %40 = arith.index_cast %c6_i32 : i32 to index
    %c0_12 = arith.constant 0 : index
    %41 = vector.load %arg3[%40, %c0_12] : memref<9x128xf32, #tpu.memory_space<vmem>>, vector<1x128xf32>
    tpu.vector_store %arg3[%40, %c0_12], %39 {strides = array<i32>} : memref<9x128xf32, #tpu.memory_space<vmem>>, vector<1x128xf32>,
    %c7_i32 = arith.constant 7 : i32
    %42 = arith.index_cast %c7_i32 : i32 to index
    %43 = memref.load %arg1[%42] : memref<9xi32, #tpu.memory_space<smem>>
    %44 = arith.index_cast %43 : i32 to index
    %c0_13 = arith.constant 0 : index
    %45 = vector.load %arg2[%44, %c0_13] : memref<16x128xf32, #tpu.memory_space<vmem>>, vector<1x128xf32>
    %46 = arith.index_cast %c7_i32 : i32 to index
    %c0_14 = arith.constant 0 : index
    %47 = vector.load %arg3[%46, %c0_14] : memref<9x128xf32, #tpu.memory_space<vmem>>, vector<1x128xf32>
    tpu.vector_store %arg3[%46, %c0_14], %45 {strides = array<i32>} : memref<9x128xf32, #tpu.memory_space<vmem>>, vector<1x128xf32>,
    %c8_i32 = arith.constant 8 : i32
    %48 = arith.index_cast %c8_i32 : i32 to index
    %49 = memref.load %arg1[%48] : memref<9xi32, #tpu.memory_space<smem>>
    %50 = arith.index_cast %49 : i32 to index
    %c0_15 = arith.constant 0 : index
    %51 = vector.load %arg2[%50, %c0_15] : memref<16x128xf32, #tpu.memory_space<vmem>>, vector<1x128xf32>
    %52 = arith.index_cast %c8_i32 : i32 to index
    %c0_16 = arith.constant 0 : index
    %53 = vector.load %arg3[%52, %c0_16] : memref<9x128xf32, #tpu.memory_space<vmem>>, vector<1x128xf32>
    tpu.vector_store %arg3[%52, %c0_16], %51 {strides = array<i32>} : memref<9x128xf32, #tpu.memory_space<vmem>>, vector<1x128xf32>,
    %c9_i32 = arith.constant 9 : i32
    return
  }
  func.func @transform_0(%arg0: i32, %arg1: memref<9xi32, #tpu.memory_space<smem>>) -> (i32, i32) {
    %c0_i32 = arith.constant 0 : i32
    %c0_i32_0 = arith.constant 0 : i32
    %c0_i32_1 = arith.constant 0 : i32
    return %c0_i32, %c0_i32_0 : i32, i32
  }
  func.func @transform_1(%arg0: i32, %arg1: memref<9xi32, #tpu.memory_space<smem>>) -> (i32, i32) {
    %c0_i32 = arith.constant 0 : i32
    %c0_i32_0 = arith.constant 0 : i32
    %c0_i32_1 = arith.constant 0 : i32
    return %c0_i32, %c0_i32_0 : i32, i32
  }
}

</mosaic_0001>

<bundles_post_ra>
// kernel: _bvp_gather.1
= control target key start
LH: loop header
LB: loop body
LE: loop exit
PB: predicated region body
PF: predicated region fallthrough
CT: control target
= control target key end

     0   :  { %s135_s12 = smov [#allocation3]   ;;  %s187_s0 = inlined_call_operand.hbm [shape: s32[9], index: 0, kind: input, shape index: {}]   ;;  %s188_s1 = inlined_call_operand.hbm [shape: f32[16,128], index: 1, kind: input, shape index: {}]   ;;  %s189_s2 = inlined_call_operand.vmem [shape: f32[9,128], index: 2, kind: output, shape index: {}]  }
   0x1   :  { %s8_s11 = sshll.u32 %s187_s0, 4  ;;  %s9_s11 = int_to_ptr.hbm [resolvable:$true] %s8_s11 }
   0x2   :  { %11 = dma.hbm_to_smem %s9_s11, 16, %s135_s12, [#allocation2] }
   0x3   :  { %131 = dma.done.wait [#allocation2], 16 }
   0x4   :  { %132 = vsyncadd [#allocation2], 4294967280 }
   0x5   :  { %14 = sfence }
   0x6   :  { %15 = vsyncpa [#allocation5], 0  ;;  %s20_s15 = sshll.u32 %s188_s1, 4  ;;  %s136_s16 = smov [#allocation4]   ;;  %s21_s15 = int_to_ptr.hbm [resolvable:$true] %s20_s15 }
   0x7   :  { %s22_s17 = sshll.u32 %s136_s16, 4  ;;  %s137_s18 = smov 128   ;;  %s23_s17 = int_to_ptr.vmem [resolvable:$true] %s22_s17 }
   0x8   :  { %s138_s19 = smov 8  }
   0x9   :  { %28 = dma.hbm_to_vmem [thread:$0]  %s21_s15, 256, %s23_s17, [#allocation5], %s137_s18, %s137_s18, %s138_s19  }
   0xa   :  { %133 = dma.done.wait [#allocation5], 256  }
   0xb   :  { %134 = vsyncadd [#allocation5], 4294967040  ;;  %s33_s0 = sld [smem:[#allocation3]] }
   0xc   :  { %s83_s20 = sld [smem:[#allocation3 + $0x1]] }
   0xd   :  { %s84_s21 = sld [smem:[#allocation3 + $0x2]] }
   0xe   :  { %s85_s22 = sld [smem:[#allocation3 + $0x3]] }
   0xf   :  { %s86_s23 = sld [smem:[#allocation3 + $0x4]] }
  0x10   :  { %s87_s24 = sld [smem:[#allocation3 + $0x5]] }
  0x11   :  { %s88_s25 = sld [smem:[#allocation3 + $0x6]]  ;;  %s34_s26 = scalar_lea.vmem [#allocation4], %s33_s0 }
  0x12   :  { %v35_v0 = vld [vmem:[%s34_s26] sm:$0x1]  ;;  %s89_s27 = sld [smem:[#allocation3 + $0x7]]  ;;  %s38_s29 = scalar_lea.vmem [#allocation4], %s83_s20 }
  0x13   :  { %36 = vst [vmem:[%s189_s2] sm:$0x1] %v35_v0  ;;  %v39_v1 = vld [vmem:[%s38_s29] sm:$0x1]  ;;  %s90_s30 = sld [smem:[#allocation3 + $0x8]]  ;;  %s42_s5 = scalar_lea.vmem [#allocation4], %s84_s21 }
  0x14   :  { %40 = vst [vmem:[%s189_s2 + $0x1] sm:$0x1] %v39_v1  ;;  %v43_v2 = vld [vmem:[%s42_s5] sm:$0x1]  ;;  %s46_s8 = scalar_lea.vmem [#allocation4], %s85_s22 }
  0x15   :  { %44 = vst [vmem:[%s189_s2 + $0x2] sm:$0x1] %v43_v2  ;;  %v47_v3 = vld [vmem:[%s46_s8] sm:$0x1]  ;;  %s50_s11 = scalar_lea.vmem [#allocation4], %s86_s23 }
  0x16   :  { %48 = vst [vmem:[%s189_s2 + $0x3] sm:$0x1] %v47_v3  ;;  %v51_v4 = vld [vmem:[%s50_s11] sm:$0x1]  ;;  %s54_s14 = scalar_lea.vmem [#allocation4], %s87_s24 }
  0x17   :  { %52 = vst [vmem:[%s189_s2 + $0x4] sm:$0x1] %v51_v4  ;;  %v55_v5 = vld [vmem:[%s54_s14] sm:$0x1]  ;;  %s58_s17 = scalar_lea.vmem [#allocation4], %s88_s25 }
  0x18   :  { %56 = vst [vmem:[%s189_s2 + $0x5] sm:$0x1] %v55_v5  ;;  %v59_v6 = vld [vmem:[%s58_s17] sm:$0x1]  ;;  %s62_s0 = scalar_lea.vmem [#allocation4], %s89_s27 }
  0x19   :  { %60 = vst [vmem:[%s189_s2 + $0x6] sm:$0x1] %v59_v6  ;;  %v63_v7 = vld [vmem:[%s62_s0] sm:$0x1]  ;;  %s66_s22 = scalar_lea.vmem [#allocation4], %s90_s30 }
  0x1a   :  { %64 = vst [vmem:[%s189_s2 + $0x7] sm:$0x1] %v63_v7  ;;  %v67_v8 = vld [vmem:[%s66_s22] sm:$0x1] }
  0x1b   :  { %68 = vst [vmem:[%s189_s2 + $0x8] sm:$0x1] %v67_v8 }
  0x1c   :  { %73 = vsyncpa [#allocation5], 1 }

</bundles_post_ra>
